<compile_context>
chip_gen: v7x
topology: tpu7x:2x2x1
jax: 0.10.0
libtpu: 0.0.40
codegen_flags: <defaults>
</compile_context>

<pallas_src>
import jax
import jax.numpy as jnp
from jax.experimental import pallas as pl
from jax.experimental.pallas import tpu as pltpu

OUT_DIM = 1
N_TASKS = 2
TARGET_HIDDEN_DIM = 15  # present in __init__ but unused in forward (kept for parity)
_LANE = 128


def _fused_linear_kernel(x_ref, wb_ref, o_ref):
    # x_ref : (1,)   f32 in SMEM  -- the all-ones scalar input (4 bytes)
    # wb_ref: (2, P) f32 in VMEM  -- row 0 = all tasks' weights, row 1 = biases
    #                               (lane-dense, zero-padded), single DMA
    # o_ref : (1, P) f32 in VMEM  -- lane-dense output, single unmasked store
    x_scalar = x_ref[0]                              # scalar read (free scalar slot)
    # Pure VPU broadcast multiply-add: no reduction, no MXU.
    o_ref[...] = wb_ref[0:1, :] * x_scalar + wb_ref[1:2, :]


def pack_params(w_stack, b_stack):
    """One-time (parameter-setup) packing of all tasks' weights/biases into a
    single lane-dense (2, P) f32 slab. NOT part of the per-call forward path.

    w_stack: (n_tasks, out_dim, 1) f32; b_stack: (n_tasks, out_dim) f32.
    Returns (wb_packed, n) with wb_packed of shape (2, P), P a 128 multiple."""
    n_tasks, out_dim, in_dim = w_stack.shape
    assert in_dim == 1, "kernel assumes in_dim == 1 (x is a single scalar)"
    n = n_tasks * out_dim
    p = max(((n + _LANE - 1) // _LANE) * _LANE, _LANE)
    wb = jnp.zeros((2, p), jnp.float32)
    wb = wb.at[0, :n].set(w_stack[..., 0].reshape(n))
    wb = wb.at[1, :n].set(b_stack.reshape(n))
    return wb, n


def toy_targetnetwork_forward(x_vec, wb_packed):
    """x_vec: (1,) f32 (the ones scalar); wb_packed: (2, P) f32 packed slab.
    Returns the padded lane-dense output slab of shape (1, P), f32."""
    p = wb_packed.shape[1]
    return pl.pallas_call(
        _fused_linear_kernel,
        out_shape=jax.ShapeDtypeStruct((1, p), jnp.float32),
        # Single invocation (no grid): whole arrays resident, zero per-step overhead.
        in_specs=[
            pl.BlockSpec(memory_space=pltpu.MemorySpace.SMEM),   # x as 1-D SMEM scalar
            pl.BlockSpec(memory_space=pltpu.MemorySpace.VMEM),   # merged W/B slab
        ],
        out_specs=pl.BlockSpec(memory_space=pltpu.MemorySpace.VMEM),
    )(x_vec, wb_packed)


if __name__ == "__main__":
    key = jax.random.PRNGKey(0)

    # Deterministic per-task parameters (shapes as the module's forward implies:
    # task weights reshape to (out_dim, 1); bias has out_dim elements).
    w_list, b_list = [], []
    for j in range(N_TASKS):
        key, k_w, k_b = jax.random.split(key, 3)
        w_list.append(jax.random.normal(k_w, (OUT_DIM, 1), jnp.float32))
        b_list.append(jax.random.normal(k_b, (OUT_DIM,), jnp.float32))

    W = jnp.stack(w_list)                        # (n_tasks, out_dim, 1)
    B = jnp.stack(b_list)                        # (n_tasks, out_dim)

    # --- one-time setup (outside the per-call forward path) ---
    wb_packed, n = pack_params(W, B)             # (2, P)
    x_vec = jnp.ones((1,), jnp.float32)          # the module's torch.ones([1, 1]) scalar

    fwd = jax.jit(toy_targetnetwork_forward)
    out_slab = jax.block_until_ready(fwd(x_vec, wb_packed))   # (1, P) padded slab

    # Consumer-side unpacking back to the module's list of per-task (1, out_dim).
    outs = [out_slab[0, j * OUT_DIM:(j + 1) * OUT_DIM].reshape(1, OUT_DIM)
            for j in range(N_TASKS)]

    # Pure-JAX reference check (F.linear: x @ W.T + b with x = ones([1,1]))
    x_ref = jnp.ones((1, 1), jnp.float32)
    for j in range(N_TASKS):
        ref = x_ref @ W[j].T + B[j][None, :]     # (1, out_dim)
        assert outs[j].shape == (1, OUT_DIM)
        assert jnp.allclose(outs[j], ref, atol=1e-6), (outs[j], ref)

    print("KERNEL_OK")
</pallas_src>

<mosaic_0001>
module attributes {stable_mosaic.version = 11 : i64} {
  func.func @_fused_linear_kernel(%arg0: memref<1xf32, #tpu.memory_space<smem>>, %arg1: memref<2x128xf32, #tpu.memory_space<vmem>>, %arg2: memref<1x128xf32, #tpu.memory_space<vmem>>) attributes {dimension_semantics = [], scalar_prefetch = 0 : i64, scratch_operands = 0 : i64, tpu.core_type = #tpu.core_type<tc>} {
    %c0 = arith.constant 0 : index
    %0 = memref.load %arg0[%c0] : memref<1xf32, #tpu.memory_space<smem>>
    %c0_0 = arith.constant 0 : index
    %c0_1 = arith.constant 0 : index
    %1 = vector.load %arg1[%c0_0, %c0_1] : memref<2x128xf32, #tpu.memory_space<vmem>>, vector<1x128xf32>
    %2 = vector.broadcast %0 : f32 to vector<1x128xf32>
    %3 = arith.mulf %1, %2 : vector<1x128xf32>
    %c1 = arith.constant 1 : index
    %c0_2 = arith.constant 0 : index
    %4 = vector.load %arg1[%c1, %c0_2] : memref<2x128xf32, #tpu.memory_space<vmem>>, vector<1x128xf32>
    %5 = arith.addf %3, %4 : vector<1x128xf32>
    %c0_3 = arith.constant 0 : index
    %c0_4 = arith.constant 0 : index
    %6 = vector.load %arg2[%c0_3, %c0_4] : memref<1x128xf32, #tpu.memory_space<vmem>>, vector<1x128xf32>
    tpu.vector_store %arg2[%c0_3, %c0_4], %5 {strides = array<i32>} : memref<1x128xf32, #tpu.memory_space<vmem>>, vector<1x128xf32>,
    return
  }
}

</mosaic_0001>

<bundles_post_ra>
// kernel: toy_targetnetwork_forward.1
= control target key start
LH: loop header
LB: loop body
LE: loop exit
PB: predicated region body
PF: predicated region fallthrough
CT: control target
= control target key end

     0   :  { %s96_s0 = inlined_call_operand.<no memory space> [shape: f32[1], index: 0, kind: input, shape index: {}]   ;;  %s97_s1 = inlined_call_operand.vmem [shape: f32[2,128], index: 1, kind: input, shape index: {}]   ;;  %s98_s2 = inlined_call_operand.hbm [shape: f32[1,128], index: 2, kind: output, shape index: {}]  }
   0x1   :  { %v14_v0 = vld [vmem:[%s97_s1] sm:$0x1]  ;;  %v15_v1 = vstv %s96_s0  ;;  %v17_v2 = vld [vmem:[%s97_s1 + $0x1] sm:$0x1] }
   0x2   :  { %8 = vsyncpa [#allocation4], 0  ;;  %v16_v3 = vmul.f32 %v15_v1, %v14_v0  ;;  %s59_s15 = smov [#allocation3]  }
   0x3   :  { %s26_s16 = sshll.u32 %s59_s15, 4  ;;  %s27_s16 = int_to_ptr.vmem [resolvable:$true] %s26_s16 }
   0x4   :  { %v18_v4 = vadd.f32 %v17_v2, %v16_v3  ;;  %s35_s17 = scalar_lea.vmem %s27_s16, 16  ;;  %s39_s18 = scalar_lea.vmem %s27_s16, 32 }
   0x5   :  { %p36_p0 = scmp.ne.s32.totalorder %s27_s16, %s35_s17  ;;  %p40_p1 = scmp.lt.s32.totalorder %s27_s16, %s27_s16 }
   0x6   :  { %19 = vst [vmem:[#allocation3] sm:$0x1] %v18_v4  ;;  %p41_p2 = scmp.lt.s32.totalorder %s39_s18, %s35_s17 }
   0x8   :  { %p42_p3 = por %p41_p2, %p40_p1 }
   0xa   :  { %p43_p4 = pnand %p42_p3, %p36_p0 }
   0xc   :  { %46 = shalt.err (!%p43_p4)
}
   0xd   :  { %s47_s20 = scalar_lea.hbm %s98_s2, 16 }
   0xe   :  { %p48_p5 = scmp.ne.s32.totalorder %s98_s2, %s47_s20  ;;  %p51_p6 = scmp.lt.u32.totalorder %s47_s20, %s98_s2 }
  0x10   :  { %p53_p7 = pnand %p51_p6, %p48_p5 }
  0x12   :  { %56 = shalt.err (!%p53_p7)
}
  0x13   :  { %29 = dma.vmem_to_hbm [thread:$0]  %s27_s16, 16, %s98_s2, [#allocation4]  }
  0x14   :  { %57 = dma.done.wait [#allocation4], 16  }
  0x15   :  { %58 = vsyncadd [#allocation4], 4294967280 }
  0x16   :  { %33 = vsyncpa [#allocation4], 1 }

</bundles_post_ra>
